<compile_context>
chip_gen: v5e
topology: v5e:2x2
jax: 0.10.0
libtpu: 0.0.40
codegen_flags: <defaults>
</compile_context>

<pallas_src>
import functools

import jax
import jax.numpy as jnp
from jax.experimental import pallas as pl
from jax.experimental.pallas import tpu as pltpu


# --------------------------------------------------------------------------- #
# Kernels
# --------------------------------------------------------------------------- #
def grn_fused_kernel(x_ref, gamma_ref, beta_ref, o_ref, *, real_c, k, approx_recip):
    """Single-pass GRN: block = (tile_n, hwp, kc); gamma/beta = (1, kc) f32."""
    x = x_ref[...]                                     # native dtype (f32 / bf16)
    xf = x.astype(jnp.float32)
    gx_sq = jnp.sum(xf * xf, axis=1, keepdims=True)    # (tile_n, 1, kc) f32

    # Fold the k lane groups (lane j -> group j//real_c, channel j%real_c) with
    # log2(k) roll+add steps.  Afterwards every lane holds the full per-channel
    # sum, replicated k times — exactly the broadcast needed for the packed
    # elementwise pass.  Static jnp.roll lowers to cheap XLU lane rotations.
    if k > 1:
        shift = (k // 2) * real_c
        while shift >= real_c:
            gx_sq = gx_sq + jnp.roll(gx_sq, shift, axis=-1)
            shift //= 2

    gx = jnp.sqrt(gx_sq)                               # (tile_n, 1, kc)
    # Channel mean: gx is replicated k times across lane groups and padded
    # channels are exactly zero, so sum/(k*real_c) is correct for packed,
    # padded and plain layouts alike.
    mean_gx = jnp.sum(gx, axis=-1, keepdims=True) * (1.0 / (k * real_c))
    if approx_recip:
        nx = gx * pl.reciprocal(mean_gx + 1e-6, approx=True)   # EUP slot (bf16 path)
    else:
        nx = gx / (mean_gx + 1e-6)

    g = gamma_ref[...][:, None, :]                     # (1, 1, kc) f32
    b = beta_ref[...][:, None, :]                      # (1, 1, kc) f32
    # Folded affine: gamma*(x*Nx) + beta + x == x*(gamma*Nx + 1) + beta.
    # coeff is cast to x.dtype before the elementwise pass (documented bf16
    # precision tradeoff; exact for f32 inputs).
    coeff = (g * nx + 1.0).astype(x.dtype)
    o_ref[...] = (x * coeff + b.astype(x.dtype)).astype(o_ref.dtype)


def grn_reduce_kernel(x_ref, gsq_ref, *, hwp_total, tile_hw, needs_mask):
    """Phase 1 of the large-image path: accumulate sum-of-squares over HW."""
    h = pl.program_id(1)

    @pl.when(h == 0)
    def _init():
        gsq_ref[...] = jnp.zeros_like(gsq_ref)

    xf = x_ref[...].astype(jnp.float32)                # (1, tile_hw, kc)
    if needs_mask:
        # Partial tail block along HW: zero out-of-range rows before reducing.
        row = jax.lax.broadcasted_iota(jnp.int32, xf.shape, 1)
        xf = jnp.where(row + h * tile_hw < hwp_total, xf, 0.0)
    gsq_ref[...] += jnp.sum(xf * xf, axis=1, keepdims=True)


def grn_apply_kernel(x_ref, coeff_ref, beta_ref, o_ref):
    """Phase 2 of the large-image path: out = x * coeff + beta (elementwise)."""
    x = x_ref[...]                                     # (1, tile_hw, kc)
    coeff = coeff_ref[...].astype(x.dtype)             # (1, 1, kc)
    b = beta_ref[...].astype(x.dtype)[:, None, :]      # (1, 1, kc)
    o_ref[...] = (x * coeff + b).astype(o_ref.dtype)


# --------------------------------------------------------------------------- #
# Heuristics
# --------------------------------------------------------------------------- #
def _cdiv(a, b):
    return -(-a // b)


def _vmem_budget_bytes():
    """~85% of per-TensorCore VMEM; conservative 64 MiB (v7x) fallback."""
    try:
        cap = int(pltpu.get_tpu_info().vmem_capacity_bytes)
    except Exception:
        cap = 64 << 20
    return int(cap * 0.85)


def _num_tensorcores():
    """2 on v7x (two TensorCores per chip), else 1 (v5e/v6e, or unknown)."""
    try:
        kind = jax.devices()[0].device_kind.lower()
    except Exception:
        return 1
    return 2 if "v7" in kind else 1


def _pick_tile_n(n, per_image_bytes, *, max_block_bytes, target_bytes, num_tc):
    budget = min(target_bytes, max_block_bytes)
    tile = int(max(1, min(n, budget // max(per_image_bytes, 1))))
    if num_tc > 1 and n >= num_tc:
        # Prefer a grid-step count that is a multiple of the TensorCore count
        # (balanced megacore split) without dropping blocks below ~1 MiB.
        steps = _cdiv(n, tile)
        while steps % num_tc and tile > 1 and (tile - 1) * per_image_bytes >= (1 << 20):
            tile -= 1
            steps = _cdiv(n, tile)
    return tile


def _pick_tile_hw(hwp, row_bytes, *, max_block_bytes, target_bytes):
    budget = min(target_bytes, max_block_bytes)
    tile = int(max(1, min(hwp, budget // max(row_bytes, 1))))
    if tile < hwp:
        tile = min(hwp, max(8, (tile // 8) * 8))       # keep sublane dim 8-aligned
    return tile


# --------------------------------------------------------------------------- #
# Wrapper
# --------------------------------------------------------------------------- #
def grn_pallas(x, gamma, beta, *, force_two_phase=False, _test_max_block_bytes=None):
    """GRN forward.  x: (N, H, W, C) channels-last; gamma/beta: (1, 1, 1, C)."""
    N, H, W, C = x.shape
    HW = H * W
    orig_dtype = x.dtype

    # ---- layout: lane-pack small channel counts, zero-pad awkward ones ------
    if C < 128 and 128 % C == 0 and HW % (128 // C) == 0:
        k, c_pad = 128 // C, C                 # pack k spatial positions into lanes
    elif C % 128 == 0:
        k, c_pad = 1, C                        # already lane-dense
    else:
        k, c_pad = 1, ((C + 127) // 128) * 128  # pad channels -> unmasked 128-lane stores
    kc = k * c_pad
    hwp = HW // k

    xp = x if c_pad == C else jnp.pad(x, ((0, 0), (0, 0), (0, 0), (0, c_pad - C)))
    x3 = xp.reshape(N, hwp, kc)

    g_c = gamma.reshape(1, C).astype(jnp.float32)
    b_c = beta.reshape(1, C).astype(jnp.float32)
    if c_pad != C:
        g_c = jnp.pad(g_c, ((0, 0), (0, c_pad - C)))
        b_c = jnp.pad(b_c, ((0, 0), (0, c_pad - C)))
    g_kc = jnp.tile(g_c, (1, k))               # lane j -> channel j % c_pad
    b_kc = jnp.tile(b_c, (1, k))

    itemsize = jnp.dtype(orig_dtype).itemsize
    row_bytes = kc * itemsize
    per_image_bytes = hwp * row_bytes

    vmem_budget = _vmem_budget_bytes()
    # Double-buffered input + output blocks (4x) plus Mosaic scratch slack.
    max_block_bytes = max(1 << 20, (vmem_budget - (6 << 20)) // 4)
    if _test_max_block_bytes is not None:
        max_block_bytes = int(_test_max_block_bytes)
    target_bytes = 8 << 20
    num_tc = _num_tensorcores()
    approx_recip = orig_dtype == jnp.bfloat16

    two_phase = force_two_phase or per_image_bytes > max_block_bytes

    if not two_phase:
        # ---- single fused pass: one HBM read + one HBM write per element ----
        tile_n = _pick_tile_n(N, per_image_bytes, max_block_bytes=max_block_bytes,
                              target_bytes=target_bytes, num_tc=num_tc)
        n_steps = pl.cdiv(N, tile_n)
        block_bytes = tile_n * per_image_bytes
        vmem_limit = int(min(vmem_budget, max(16 << 20, 4 * block_bytes + (8 << 20))))

        x_spec_kwargs = {}
        if n_steps >= 3 and block_bytes <= (1 << 20):
            # Tiny blocks + short compute: deepen input pipelining to hide DMA.
            x_spec_kwargs["pipeline_mode"] = pl.Buffered(3)
        x_spec = pl.BlockSpec((tile_n, hwp, kc), lambda n: (n, 0, 0), **x_spec_kwargs)

        kern = functools.partial(grn_fused_kernel, real_c=C, k=k,
                                 approx_recip=approx_recip)
        out3 = pl.pallas_call(
            kern,
            out_shape=jax.ShapeDtypeStruct((N, hwp, kc), orig_dtype),
            grid_spec=pltpu.PrefetchScalarGridSpec(
                num_scalar_prefetch=0,
                grid=(n_steps,),
                in_specs=[
                    x_spec,
                    pl.BlockSpec((1, kc), lambda n: (0, 0)),
                    pl.BlockSpec((1, kc), lambda n: (0, 0)),
                ],
                out_specs=pl.BlockSpec((tile_n, hwp, kc), lambda n: (n, 0, 0)),
            ),
            compiler_params=pltpu.CompilerParams(
                dimension_semantics=("parallel",),
                vmem_limit_bytes=vmem_limit,
            ),
        )(x3, g_kc, b_kc)
    else:
        # ---- two-phase path: images too large for a single resident block ----
        tile_hw = _pick_tile_hw(hwp, row_bytes, max_block_bytes=max_block_bytes,
                                target_bytes=target_bytes)
        h_steps = pl.cdiv(hwp, tile_hw)
        needs_mask = (hwp % tile_hw) != 0
        block_bytes = tile_hw * row_bytes

        # Phase 1: per-image, per-lane sum of squares (f32 accumulator lives in
        # the resident output block across the "arbitrary" HW axis).
        reduce_kern = functools.partial(grn_reduce_kernel, hwp_total=hwp,
                                        tile_hw=tile_hw, needs_mask=needs_mask)
        gsq = pl.pallas_call(
            reduce_kern,
            out_shape=jax.ShapeDtypeStruct((N, 1, kc), jnp.float32),
            grid_spec=pltpu.PrefetchScalarGridSpec(
                num_scalar_prefetch=0,
                grid=(N, h_steps),
                in_specs=[pl.BlockSpec((1, tile_hw, kc), lambda n, h: (n, h, 0))],
                out_specs=pl.BlockSpec((1, 1, kc), lambda n, h: (n, 0, 0)),
            ),
            compiler_params=pltpu.CompilerParams(
                dimension_semantics=("parallel", "arbitrary"),
                vmem_limit_bytes=int(min(vmem_budget,
                                         max(16 << 20, 2 * block_bytes + (8 << 20)))),
            ),
        )(x3)

        # Tiny (N, C) epilogue in plain JAX: Gx, Nx, folded affine coefficient.
        gsq_c = gsq.reshape(N, k, c_pad).sum(axis=1)            # (N, c_pad)
        gx = jnp.sqrt(gsq_c)
        mean_gx = jnp.sum(gx, axis=-1, keepdims=True) / C       # real-channel mean
        nx = gx / (mean_gx + 1e-6)
        coeff = g_c * nx + 1.0                                  # (N, c_pad) f32
        coeff_kc = jnp.tile(coeff, (1, k)).reshape(N, 1, kc)

        # Phase 2: elementwise apply, tiled over (N, HW).
        out3 = pl.pallas_call(
            grn_apply_kernel,
            out_shape=jax.ShapeDtypeStruct((N, hwp, kc), orig_dtype),
            grid_spec=pltpu.PrefetchScalarGridSpec(
                num_scalar_prefetch=0,
                grid=(N, h_steps),
                in_specs=[
                    pl.BlockSpec((1, tile_hw, kc), lambda n, h: (n, h, 0)),
                    pl.BlockSpec((1, 1, kc), lambda n, h: (n, 0, 0)),
                    pl.BlockSpec((1, kc), lambda n, h: (0, 0)),
                ],
                out_specs=pl.BlockSpec((1, tile_hw, kc), lambda n, h: (n, h, 0)),
            ),
            compiler_params=pltpu.CompilerParams(
                dimension_semantics=("parallel", "parallel"),
                vmem_limit_bytes=int(min(vmem_budget,
                                         max(16 << 20, 4 * block_bytes + (8 << 20)))),
            ),
        )(x3, coeff_kc, b_kc)

    out = out3.reshape(N, H, W, c_pad)
    if c_pad != C:
        out = out[..., :C]
    return out


def grn_reference(x, gamma, beta):
    """Pure-JAX reference mirroring the PyTorch forward."""
    x32 = x.astype(jnp.float32)
    gx = jnp.sqrt(jnp.sum(x32 * x32, axis=(1, 2), keepdims=True))   # (N,1,1,C)
    nx = gx / (jnp.mean(gx, axis=-1, keepdims=True) + 1e-6)
    return (gamma * (x32 * nx) + beta + x32).astype(x.dtype)


if __name__ == "__main__":
    key = jax.random.PRNGKey(0)
    k_x, k_g, k_b, k_x2, k_g2, k_b2 = jax.random.split(key, 6)

    # Main case: small NHWC input, dim = C = 32 (lane-packed fused path).
    N, H, W, C = 2, 16, 16, 32
    x = jax.random.normal(k_x, (N, H, W, C), dtype=jnp.float32)
    gamma = 0.1 * jax.random.normal(k_g, (1, 1, 1, C), dtype=jnp.float32)
    beta = 0.1 * jax.random.normal(k_b, (1, 1, 1, C), dtype=jnp.float32)

    ref = grn_reference(x, gamma, beta)
    out = jax.block_until_ready(grn_pallas(x, gamma, beta))
    assert out.shape == (N, H, W, C)
    assert jnp.allclose(out, ref, atol=1e-5, rtol=1e-5), "fused path mismatch"

    # Two-phase (reduce + apply) large-image path, forced at small shapes so
    # the accumulation / tail-masking code is exercised here as well.
    out_tp = jax.block_until_ready(
        grn_pallas(x, gamma, beta, force_two_phase=True,
                   _test_max_block_bytes=12 * 1024))
    assert jnp.allclose(out_tp, ref, atol=1e-5, rtol=1e-5), "two-phase mismatch"

    # Channel-padding path: C neither divides nor is a multiple of 128.
    N2, H2, W2, C2 = 2, 8, 8, 24
    x2 = jax.random.normal(k_x2, (N2, H2, W2, C2), dtype=jnp.float32)
    gamma2 = 0.1 * jax.random.normal(k_g2, (1, 1, 1, C2), dtype=jnp.float32)
    beta2 = 0.1 * jax.random.normal(k_b2, (1, 1, 1, C2), dtype=jnp.float32)
    out2 = jax.block_until_ready(grn_pallas(x2, gamma2, beta2))
    assert jnp.allclose(out2, grn_reference(x2, gamma2, beta2),
                        atol=1e-5, rtol=1e-5), "padded-C path mismatch"

    print("KERNEL_OK")
</pallas_src>

<mosaic_0001>
module attributes {stable_mosaic.version = 11 : i64} {
  func.func @grn_fused_kernel(%arg0: i32, %arg1: memref<2x64x128xf32, #tpu.memory_space<vmem>>, %arg2: memref<1x128xf32, #tpu.memory_space<vmem>>, %arg3: memref<1x128xf32, #tpu.memory_space<vmem>>, %arg4: memref<2x64x128xf32, #tpu.memory_space<vmem>>) attributes {dimension_semantics = [#tpu.dimension_semantics<parallel>], iteration_bounds = array<i64: 1>, scalar_prefetch = 0 : i64, scratch_operands = 0 : i64, tpu.core_type = #tpu.core_type<tc>, window_params = [{transform_indices = @transform_0, window_bounds = array<i64: 2, 64, 128>}, {pipeline_mode = #tpu.pipeline_mode<synchronous>, transform_indices = @transform_1, window_bounds = array<i64: 1, 128>}, {pipeline_mode = #tpu.pipeline_mode<synchronous>, transform_indices = @transform_2, window_bounds = array<i64: 1, 128>}, {transform_indices = @transform_3, window_bounds = array<i64: 2, 64, 128>}]} {
    %c0 = arith.constant 0 : index
    %c0_0 = arith.constant 0 : index
    %c0_1 = arith.constant 0 : index
    %0 = vector.load %arg1[%c0, %c0_0, %c0_1] : memref<2x64x128xf32, #tpu.memory_space<vmem>>, vector<2x64x128xf32>
    %1 = arith.mulf %0, %0 : vector<2x64x128xf32>
    %cst = arith.constant dense<0.000000e+00> : vector<2x128xf32>
    %2 = vector.multi_reduction <add>, %1, %cst [1] : vector<2x64x128xf32> to vector<2x128xf32>
    %3 = vector.shape_cast %2 : vector<2x128xf32> to vector<2x1x128xf32>
    %4 = vector.extract_strided_slice %3 {offsets = [0, 0, 64], sizes = [2, 1, 64], strides = [1, 1, 1]} : vector<2x1x128xf32> to vector<2x1x64xf32>
    %5 = vector.extract_strided_slice %3 {offsets = [0, 0, 0], sizes = [2, 1, 64], strides = [1, 1, 1]} : vector<2x1x128xf32> to vector<2x1x64xf32>
    %6 = tpu.concatenate %4, %5 in 2 : vector<2x1x64xf32>, vector<2x1x64xf32> -> vector<2x1x128xf32>
    %7 = arith.addf %3, %6 : vector<2x1x128xf32>
    %8 = vector.extract_strided_slice %7 {offsets = [0, 0, 96], sizes = [2, 1, 32], strides = [1, 1, 1]} : vector<2x1x128xf32> to vector<2x1x32xf32>
    %9 = vector.extract_strided_slice %7 {offsets = [0, 0, 0], sizes = [2, 1, 96], strides = [1, 1, 1]} : vector<2x1x128xf32> to vector<2x1x96xf32>
    %10 = tpu.concatenate %8, %9 in 2 : vector<2x1x32xf32>, vector<2x1x96xf32> -> vector<2x1x128xf32>
    %11 = arith.addf %7, %10 : vector<2x1x128xf32>
    %12 = math.sqrt %11 : vector<2x1x128xf32>
    %cst_2 = arith.constant dense<0.000000e+00> : vector<2x1xf32>
    %13 = vector.multi_reduction <add>, %12, %cst_2 [2] : vector<2x1x128xf32> to vector<2x1xf32>
    %14 = vector.shape_cast %13 : vector<2x1xf32> to vector<2x1x1xf32>
    %cst_3 = arith.constant 7.812500e-03 : f32
    %15 = vector.broadcast %cst_3 : f32 to vector<2x1x1xf32>
    %16 = arith.mulf %14, %15 : vector<2x1x1xf32>
    %cst_4 = arith.constant 9.99999997E-7 : f32
    %17 = vector.broadcast %cst_4 : f32 to vector<2x1x1xf32>
    %18 = arith.addf %16, %17 : vector<2x1x1xf32>
    %19 = vector.broadcast %18 : vector<2x1x1xf32> to vector<2x1x128xf32>
    %20 = arith.divf %12, %19 : vector<2x1x128xf32>
    %c0_5 = arith.constant 0 : index
    %c0_6 = arith.constant 0 : index
    %21 = vector.load %arg2[%c0_5, %c0_6] : memref<1x128xf32, #tpu.memory_space<vmem>>, vector<1x128xf32>
    %22 = vector.shape_cast %21 : vector<1x128xf32> to vector<1x1x128xf32>
    %c0_7 = arith.constant 0 : index
    %c0_8 = arith.constant 0 : index
    %23 = vector.load %arg3[%c0_7, %c0_8] : memref<1x128xf32, #tpu.memory_space<vmem>>, vector<1x128xf32>
    %24 = vector.shape_cast %23 : vector<1x128xf32> to vector<1x1x128xf32>
    %25 = vector.broadcast %22 : vector<1x1x128xf32> to vector<2x1x128xf32>
    %26 = arith.mulf %25, %20 : vector<2x1x128xf32>
    %cst_9 = arith.constant 1.000000e+00 : f32
    %27 = vector.broadcast %cst_9 : f32 to vector<2x1x128xf32>
    %28 = arith.addf %26, %27 : vector<2x1x128xf32>
    %29 = vector.broadcast %28 : vector<2x1x128xf32> to vector<2x64x128xf32>
    %30 = arith.mulf %0, %29 : vector<2x64x128xf32>
    %31 = vector.broadcast %24 : vector<1x1x128xf32> to vector<2x64x128xf32>
    %32 = arith.addf %30, %31 : vector<2x64x128xf32>
    %c0_10 = arith.constant 0 : index
    %c0_11 = arith.constant 0 : index
    %c0_12 = arith.constant 0 : index
    %33 = vector.load %arg4[%c0_10, %c0_11, %c0_12] : memref<2x64x128xf32, #tpu.memory_space<vmem>>, vector<2x64x128xf32>
    tpu.vector_store %arg4[%c0_10, %c0_11, %c0_12], %32 {strides = array<i32>} : memref<2x64x128xf32, #tpu.memory_space<vmem>>, vector<2x64x128xf32>,
    return
  }
  func.func @transform_0(%arg0: i32) -> (i32, i32, i32) {
    %c0_i32 = arith.constant 0 : i32
    %c0_i32_0 = arith.constant 0 : i32
    %c0_i32_1 = arith.constant 0 : i32
    return %arg0, %c0_i32, %c0_i32_0 : i32, i32, i32
  }
  func.func @transform_1(%arg0: i32) -> (i32, i32) {
    %c0_i32 = arith.constant 0 : i32
    %c0_i32_0 = arith.constant 0 : i32
    %c0_i32_1 = arith.constant 0 : i32
    return %c0_i32, %c0_i32_0 : i32, i32
  }
  func.func @transform_2(%arg0: i32) -> (i32, i32) {
    %c0_i32 = arith.constant 0 : i32
    %c0_i32_0 = arith.constant 0 : i32
    %c0_i32_1 = arith.constant 0 : i32
    return %c0_i32, %c0_i32_0 : i32, i32
  }
  func.func @transform_3(%arg0: i32) -> (i32, i32, i32) {
    %c0_i32 = arith.constant 0 : i32
    %c0_i32_0 = arith.constant 0 : i32
    %c0_i32_1 = arith.constant 0 : i32
    return %arg0, %c0_i32, %c0_i32_0 : i32, i32, i32
  }
}

</mosaic_0001>

<bundles_post_ra>
// kernel: tpu_custom_call.1
= control target key start
LH: loop header
LB: loop body
LE: loop exit
PB: predicated region body
PF: predicated region fallthrough
CT: control target
= control target key end

     0   :  { %8 = vsyncpa [#allocation3], 0  ;;  %s490_s0 = inlined_call_operand.hbm [shape: f32[2,64,128], index: 0, kind: input, shape index: {}]   ;;  %s491_s1 = inlined_call_operand.hbm [shape: f32[1,128], index: 1, kind: input, shape index: {}]   ;;  %s492_s2 = inlined_call_operand.vmem [shape: f32[1,128], index: 2, kind: input, shape index: {}]   ;;  %s493_s3 = inlined_call_operand.hbm [shape: f32[2,64,128], index: 3, kind: output, shape index: {}]  }
   0x1   :  { %9 = vsyncpa [#allocation6], 0 }
   0x2   :  { %10 = vsyncpa [#allocation4], 0  ;;  %s15_s14 = sshll.u32 %s490_s0, 4  ;;  %s365_s15 = smov [#allocation2]   ;;  %s16_s14 = int_to_ptr.hbm [resolvable:$true] %s15_s14 }
   0x3   :  { %s17_s16 = sshll.u32 %s365_s15, 4  ;;  %s29_s19 = sshll.u32 %s491_s1, 4  ;;  %s18_s16 = int_to_ptr.vmem [resolvable:$true] %s17_s16  ;;  %s30_s19 = int_to_ptr.hbm [resolvable:$true] %s29_s19 }
   0x4   :  { %s366_s20 = smov 128   ;;  %s367_s21 = smov 8  }
   0x5   :  { %23 = dma.hbm_to_vmem [thread:$0]  %s16_s14, 2048, %s18_s16, [#allocation3], %s366_s20, %s366_s20, %s367_s21  }
   0x6   :  { %s368_s22 = smov [#allocation5]  }
   0x7   :  { %s31_s23 = sshll.u32 %s368_s22, 4  ;;  %s32_s23 = int_to_ptr.vmem [resolvable:$true] %s31_s23 }
   0x8   :  { %34 = dma.hbm_to_vmem [thread:$0]  %s30_s19, 16, %s32_s23, [#allocation6]  }
   0x9   :  { %359 = dma.done.wait [#allocation3], 2048  }
   0xa   :  { %360 = vsyncadd [#allocation3], 4294965248 }
   0xb   :  { %361 = dma.done.wait [#allocation6], 16  }
   0xc   :  { %362 = vsyncadd [#allocation6], 4294967280  ;;  %v401_v0 = vld [vmem:[#allocation2] sm:$0xff]  ;;  %v403_v1 = vld [vmem:[#allocation2 + $0x8] sm:$0xff]  ;;  %s369_s0 = smov 64   ;;  %s370_s1 = smov 32  }
   0xd   :  { %v405_v2 = vld [vmem:[#allocation2 + $0x10] sm:$0xff]  ;;  %v407_v3 = vld [vmem:[#allocation2 + $0x18] sm:$0xff]  ;;  %v61_v4 = vmul.f32 %v401_v0, %v401_v0  ;;  %v62_v5 = vmul.f32 %v403_v1, %v403_v1  ;;  %v415_v7 = vld [vmem:[#allocation2 + $0x20] sm:$0xff]  ;;  %vm147_vm1 = vcmask 1040384   ;;  %s257_s29 = sshll.u32 %s493_s3, 4  ;;  %s258_s29 = int_to_ptr.hbm [resolvable:$true] %s257_s29 }
   0xe   :  { %v63_v6 = vmul.f32 %v405_v2, %v405_v2  ;;  %v417_v8 = vld [vmem:[#allocation2 + $0x40] sm:$0xff]  ;;  %v64_v9 = vmul.f32 %v407_v3, %v407_v3  ;;  %v421_v11 = vld [vmem:[#allocation2 + $0x48] sm:$0xff]  ;;  %v423_v12 = vld [vmem:[#allocation2 + $0x50] sm:$0xff]  ;;  %v65_v18 = vmul.f32 %v415_v7, %v415_v7 }
   0xf   :  { %v77_v10 = vadd.f32 %v62_v5, %v61_v4  ;;  %v425_v13 = vld [vmem:[#allocation2 + $0x58] sm:$0xff]  ;;  %v69_v14 = vmul.f32 %v417_v8, %v417_v8  ;;  %v429_v15 = vld [vmem:[#allocation2 + $0x28] sm:$0xff]  ;;  %v70_v16 = vmul.f32 %v421_v11, %v421_v11  ;;  %v71_v17 = vmul.f32 %v423_v12, %v423_v12  ;;  %v437_v20 = vld [vmem:[#allocation2 + $0x60] sm:$0xff] }
  0x10   :  { %v439_v21 = vld [vmem:[#allocation2 + $0x30] sm:$0xff]  ;;  %v72_v22 = vmul.f32 %v425_v13, %v425_v13  ;;  %v66_v24 = vmul.f32 %v429_v15, %v429_v15  ;;  %v445_v26 = vld [vmem:[#allocation2 + $0x68] sm:$0xff]  ;;  %v447_v27 = vld [vmem:[#allocation2 + $0x38] sm:$0xff]  ;;  %v73_v28 = vmul.f32 %v437_v20, %v437_v20 }
  0x11   :  { %v78_v19 = vadd.f32 %v77_v10, %v63_v6  ;;  %v90_v23 = vadd.f32 %v70_v16, %v69_v14  ;;  %v67_v30 = vmul.f32 %v439_v21, %v439_v21  ;;  %v453_v32 = vld [vmem:[#allocation2 + $0x70] sm:$0xff]  ;;  %v74_v33 = vmul.f32 %v445_v26, %v445_v26  ;;  %v459_v37 = vld [vmem:[#allocation2 + $0x78] sm:$0xff] }
  0x12   :  { %v68_v35 = vmul.f32 %v447_v27, %v447_v27  ;;  %v75_v38 = vmul.f32 %v453_v32, %v453_v32  ;;  %v76_v41 = vmul.f32 %v459_v37, %v459_v37 }
  0x13   :  { %v79_v25 = vadd.f32 %v78_v19, %v64_v9  ;;  %v91_v29 = vadd.f32 %v90_v23, %v71_v17 }
  0x15   :  { %v80_v31 = vadd.f32 %v79_v25, %v65_v18  ;;  %v92_v34 = vadd.f32 %v91_v29, %v72_v22 }
  0x17   :  { %v81_v36 = vadd.f32 %v80_v31, %v66_v24  ;;  %v93_v39 = vadd.f32 %v92_v34, %v73_v28 }
  0x19   :  { %v82_v40 = vadd.f32 %v81_v36, %v67_v30  ;;  %v94_v42 = vadd.f32 %v93_v39, %v74_v33 }
  0x1b   :  { %v83_v43 = vadd.f32 %v82_v40, %v68_v35  ;;  %v95_v44 = vadd.f32 %v94_v42, %v75_v38 }
  0x1d   :  { %v84_v45 = vrot.slane %v83_v43, 4  ;;  %v96_v46 = vadd.f32 %v95_v44, %v76_v41 }
  0x1f   :  { %v85_v47 = vadd.f32 %v84_v45, %v83_v43  ;;  %v97_v48 = vrot.slane %v96_v46, 4 }
  0x21   :  { %v86_v49 = vrot.slane %v85_v47, 2  ;;  %v98_v50 = vadd.f32 %v97_v48, %v96_v46 }
  0x23   :  { %v87_v51 = vadd.f32 %v86_v49, %v85_v47  ;;  %v99_v52 = vrot.slane %v98_v50, 2 }
  0x25   :  { %v88_v53 = vrot.slane %v87_v51, 1  ;;  %v100_v54 = vadd.f32 %v99_v52, %v98_v50 }
  0x27   :  { %v89_v55 = vadd.f32 %v88_v53, %v87_v51  ;;  %v101_v56 = vrot.slane %v100_v54, 1 }
  0x29   :  { %105 = vrot.lane.b32.xlu0 %v89_v55, %s369_s0  ;;  %v102_v57 = vadd.f32 %v101_v56, %v100_v54 }
  0x31   :  { %107 = vrot.lane.b32.xlu0 %v102_v57, %s369_s0 }
  0x9b   :  { %v106_v58 = vpop.permute.xlu0 %105 }
  0x9c   :  { %v111_v59 = vadd.f32 %v106_v58, %v89_v55 }
  0x9e   :  { %115 = vrot.lane.b32.xlu1 %v111_v59, %s370_s1 }
  0xa3   :  { %v108_v60 = vpop.permute.xlu0 %107 }
  0xa4   :  { %v112_v61 = vadd.f32 %v108_v60, %v102_v57  ;;  %v188_v57 = vld [vmem:[#allocation5] sm:$0x1] }
  0xa6   :  { %117 = vrot.lane.b32.xlu1 %v112_v61, %s370_s1 }
 0x110   :  { %v116_v62 = vpop.permute.xlu1 %115 }
 0x111   :  { %v121_v63 = vadd.f32 %v116_v62, %v111_v59 }
 0x113   :  { %279 = vrsqrt.f32 %v121_v63  ;;  %vm130_vm0 = vcmp.eq.f32.partialorder %v121_v63, inf  ;;  %v133_v24 = vand.u32 2147483648, %v121_v63  ;;  %vm132_vm2 = vcmp.eq.f32.partialorder %v121_v63, 0.0 }
 0x118   :  { %v118_v4 = vpop.permute.xlu1 %117 }
 0x119   :  { %v280_v5 = vpop.eup %279  ;;  %v122_v6 = vadd.f32 %v118_v4, %v112_v61 }
 0x11a   :  { %v124_v9 = vmul.f32 %v280_v5, %v121_v63 }
 0x11b   :  { %281 = vrsqrt.f32 %v122_v6  ;;  %vm142_vm3 = vcmp.eq.f32.partialorder %v122_v6, inf  ;;  %v145_v35 = vand.u32 2147483648, %v122_v6  ;;  %vm144_vm4 = vcmp.eq.f32.partialorder %v122_v6, 0.0 }
 0x11c   :  { %v125_v10 = vmul.f32 %v280_v5, %v124_v9  ;;  %v278_v9 = vld [vmem:[%s492_s2] ss:$0 sm:$0xff]  ;;  %s371_s2 = smov [#allocation7]  }
 0x11d   :  { %s255_s26 = sshll.u32 %s371_s2, 4  ;;  %s256_s26 = int_to_ptr.vmem [resolvable:$true] %s255_s26 }
 0x11e   :  { %v126_v14 = vmul.f32 0.5, %v125_v10 }
 0x120   :  { %v127_v16 = vsub.f32 1.5, %v126_v14 }
 0x121   :  { %v282_v17 = vpop.eup %281 }
 0x122   :  { %v128_v18 = vmul.f32 %v280_v5, %v127_v16  ;;  %v136_v19 = vmul.f32 %v282_v17, %v122_v6 }
 0x124   :  { %v129_v22 = vmul.f32 %v128_v18, %v121_v63  ;;  %v137_v23 = vmul.f32 %v282_v17, %v136_v19 }
 0x126   :  { %v131_v25 = vsel %vm130_vm0, %v121_v63, %v129_v22  ;;  %v138_v28 = vmul.f32 0.5, %v137_v23 }
 0x127   :  { %v134_v29 = vsel %vm132_vm2, %v133_v24, %v131_v25 }
 0x128   :  { %v148_v30 = vsel %vm147_vm1, %v134_v29, 0.0  ;;  %v139_v31 = vsub.f32 1.5, %v138_v28 }
 0x129   :  { %149 = vadd.xlane.f32.xlu2 %v148_v30 }
 0x12a   :  { %v140_v33 = vmul.f32 %v282_v17, %v139_v31 }
 0x12c   :  { %v141_v34 = vmul.f32 %v140_v33, %v122_v6 }
 0x12e   :  { %v143_v36 = vsel %vm142_vm3, %v122_v6, %v141_v34 }
 0x12f   :  { %v146_v38 = vsel %vm144_vm4, %v145_v35, %v143_v36 }
 0x130   :  { %v151_v39 = vsel %vm147_vm1, %v146_v38, 0.0 }
 0x131   :  { %152 = vadd.xlane.f32.xlu2 %v151_v39 }
 0x19c   :  { %v150_v40 = vpop.xlane.xlu2 %149 }
 0x19d   :  { %v154_v41 = vmul.f32 0.0078125, %v150_v40 }
 0x19f   :  { %v156_v42 = vadd.f32 1e-06, %v154_v41 }
 0x1a1   :  { %283 = vrcp.f32 %v156_v42  ;;  %v169_v49 = vand.u32 2147483648, %v156_v42  ;;  %v167_v51 = vand.u32 2147483647, %v156_v42  ;;  %vm163_vm6 = vweird.f32 %v156_v42 }
 0x1a3   :  { %v170_v54 = vor.u32 1.1754944e-38, %v169_v49  ;;  %vm168_vm8 = vcmp.eq.f32.partialorder %v167_v51, 8.507059e+37 }
 0x1a4   :  { %v153_v43 = vpop.xlane.xlu2 %152 }
 0x1a5   :  { %v155_v44 = vmul.f32 0.0078125, %v153_v43 }
 0x1a7   :  { %v284_v45 = vpop.eup %283  ;;  %v157_v46 = vadd.f32 1e-06, %v155_v44 }
 0x1a8   :  { %v159_v47 = vmul.f32 %v284_v45, %v156_v42  ;;  %vm164_vm5 = vweird.f32 %v284_v45 }
 0x1a9   :  { %285 = vrcp.f32 %v157_v46  ;;  %vm165_vm7 = vmor %vm163_vm6, %vm164_vm5  ;;  %v182_v63 = vand.u32 2147483647, %v157_v46  ;;  %v184_v4 = vand.u32 2147483648, %v157_v46  ;;  %vm178_vm10 = vweird.f32 %v157_v46 }
 0x1aa   :  { %v160_v48 = vsub.f32 1.0, %v159_v47 }
 0x1ab   :  { %vm183_vm12 = vcmp.eq.f32.partialorder %v182_v63, 8.507059e+37  ;;  %v185_v16 = vor.u32 1.1754944e-38, %v184_v4 }
 0x1ac   :  { %v161_v50 = vmul.f32 %v284_v45, %v160_v48 }
 0x1ae   :  { %v162_v52 = vadd.f32 %v284_v45, %v161_v50 }
 0x1af   :  { %v286_v53 = vpop.eup %285 }
 0x1b0   :  { %v166_v55 = vsel %vm165_vm7, %v284_v45, %v162_v52  ;;  %v174_v56 = vmul.f32 %v286_v53, %v157_v46  ;;  %vm179_vm9 = vweird.f32 %v286_v53 }
 0x1b1   :  { %v171_v58 = vsel %vm168_vm8, %v170_v54, %v166_v55  ;;  %vm180_vm11 = vmor %vm178_vm10, %vm179_vm9 }
 0x1b2   :  { %v172_v59 = vmul.f32 %v171_v58, %v134_v29  ;;  %v175_v60 = vsub.f32 1.0, %v174_v56 }
 0x1b4   :  { %v190_v61 = vmul.f32 %v188_v57, %v172_v59  ;;  %v176_v62 = vmul.f32 %v286_v53, %v175_v60 }
 0x1b6   :  { %v192_v5 = vadd.f32 1.0, %v190_v61  ;;  %v177_v6 = vadd.f32 %v286_v53, %v176_v62 }
 0x1b8   :  { %v196_v10 = vperm.slane %v192_v5, 0  ;;  %v181_v14 = vsel %vm180_vm11, %v286_v53, %v177_v6 }
 0x1b9   :  { %v186_v25 = vsel %vm183_vm12, %v185_v16, %v181_v14 }
 0x1ba   :  { %v200_v17 = vmul.f32 %v196_v10, %v401_v0  ;;  %v201_v18 = vmul.f32 %v196_v10, %v403_v1  ;;  %v202_v19 = vmul.f32 %v196_v10, %v405_v2  ;;  %v203_v22 = vmul.f32 %v196_v10, %v407_v3 }
 0x1bb   :  { %v204_v23 = vmul.f32 %v196_v10, %v415_v7  ;;  %v205_v24 = vmul.f32 %v196_v10, %v429_v15  ;;  %v206_v28 = vmul.f32 %v196_v10, %v439_v21  ;;  %v207_v33 = vmul.f32 %v196_v10, %v447_v27 }
 0x1bc   :  { %v219_v29 = vadd.f32 %v278_v9, %v200_v17  ;;  %v220_v30 = vadd.f32 %v278_v9, %v201_v18  ;;  %v221_v31 = vadd.f32 %v278_v9, %v202_v19  ;;  %v222_v34 = vadd.f32 %v278_v9, %v203_v22 }
 0x1bd   :  { %v223_v0 = vadd.f32 %v278_v9, %v204_v23  ;;  %v187_v1 = vmul.f32 %v186_v25, %v146_v38  ;;  %v224_v35 = vadd.f32 %v278_v9, %v205_v24  ;;  %v225_v2 = vadd.f32 %v278_v9, %v206_v28 }
 0x1be   :  { %235 = vst [vmem:[#allocation7] sm:$0xff] %v219_v29  ;;  %v226_v7 = vadd.f32 %v278_v9, %v207_v33 }
 0x1bf   :  { %236 = vst [vmem:[#allocation7 + $0x8] sm:$0xff] %v220_v30  ;;  %v191_v3 = vmul.f32 %v188_v57, %v187_v1 }
 0x1c0   :  { %237 = vst [vmem:[#allocation7 + $0x10] sm:$0xff] %v221_v31 }
 0x1c1   :  { %238 = vst [vmem:[#allocation7 + $0x18] sm:$0xff] %v222_v34  ;;  %v193_v15 = vadd.f32 1.0, %v191_v3 }
 0x1c2   :  { %239 = vst [vmem:[#allocation7 + $0x20] sm:$0xff] %v223_v0 }
 0x1c3   :  { %240 = vst [vmem:[#allocation7 + $0x28] sm:$0xff] %v224_v35  ;;  %v197_v21 = vperm.slane %v193_v15, 0 }
 0x1c4   :  { %241 = vst [vmem:[#allocation7 + $0x30] sm:$0xff] %v225_v2 }
 0x1c5   :  { %242 = vst [vmem:[#allocation7 + $0x38] sm:$0xff] %v226_v7  ;;  %v208_v36 = vmul.f32 %v197_v21, %v417_v8  ;;  %v209_v27 = vmul.f32 %v197_v21, %v421_v11  ;;  %v210_v39 = vmul.f32 %v197_v21, %v423_v12  ;;  %v211_v38 = vmul.f32 %v197_v21, %v425_v13 }
 0x1c6   :  { %v212_v40 = vmul.f32 %v197_v21, %v437_v20  ;;  %v213_v41 = vmul.f32 %v197_v21, %v445_v26  ;;  %v214_v42 = vmul.f32 %v197_v21, %v453_v32  ;;  %v215_v46 = vmul.f32 %v197_v21, %v459_v37 }
 0x1c7   :  { %v227_v43 = vadd.f32 %v278_v9, %v208_v36  ;;  %v228_v44 = vadd.f32 %v278_v9, %v209_v27  ;;  %v229_v45 = vadd.f32 %v278_v9, %v210_v39  ;;  %v230_v47 = vadd.f32 %v278_v9, %v211_v38 }
 0x1c8   :  { %v231_v48 = vadd.f32 %v278_v9, %v212_v40  ;;  %v232_v8 = vadd.f32 %v278_v9, %v213_v41  ;;  %v233_v11 = vadd.f32 %v278_v9, %v214_v42  ;;  %v234_v12 = vadd.f32 %v278_v9, %v215_v46 }
 0x1c9   :  { %243 = vst [vmem:[#allocation7 + $0x40] sm:$0xff] %v227_v43 }
 0x1ca   :  { %244 = vst [vmem:[#allocation7 + $0x48] sm:$0xff] %v228_v44 }
 0x1cb   :  { %245 = vst [vmem:[#allocation7 + $0x50] sm:$0xff] %v229_v45 }
 0x1cc   :  { %246 = vst [vmem:[#allocation7 + $0x58] sm:$0xff] %v230_v47 }
 0x1cd   :  { %247 = vst [vmem:[#allocation7 + $0x60] sm:$0xff] %v231_v48 }
 0x1ce   :  { %248 = vst [vmem:[#allocation7 + $0x68] sm:$0xff] %v232_v8 }
 0x1cf   :  { %249 = vst [vmem:[#allocation7 + $0x70] sm:$0xff] %v233_v11 }
 0x1d0   :  { %250 = vst [vmem:[#allocation7 + $0x78] sm:$0xff] %v234_v12 }
 0x1d1   :  { %263 = dma.vmem_to_hbm [thread:$0]  %s256_s26, 2048, %s258_s29, [#allocation4], %s366_s20, %s366_s20, %s367_s21  }
 0x1d2   :  { %363 = dma.done.wait [#allocation4], 2048  }
 0x1d3   :  { %364 = vsyncadd [#allocation4], 4294965248 }
 0x1d4   :  { %268 = vsyncpa [#allocation3], 1 }
 0x1d5   :  { %269 = vsyncpa [#allocation6], 1 }
 0x1d6   :  { %270 = vsyncpa [#allocation4], 1 }

</bundles_post_ra>
